<compile_context>
chip_gen: v5e
topology: v5e:2x2
jax: 0.10.0
libtpu: 0.0.40
codegen_flags: <defaults>
</compile_context>

<pallas_src>
import functools

import jax
import jax.numpy as jnp
from jax.experimental import pallas as pl
from jax.experimental.pallas import tpu as pltpu


def _endfc_kernel(x_ref, w1_ref, b1_ref, w2_ref, b2_ref, w3_ref, b3_ref, o_ref):
    # x_ref block: (1, C_in, tm) bf16 -> x: (C_in, tm), pixels on lanes.
    x = x_ref[0]

    # fc1 + ReLU:  (hid, C_in)bf16 @ (C_in, tm)bf16 -> f32 accumulation.
    h1 = jnp.dot(w1_ref[...], x, preferred_element_type=jnp.float32) + b1_ref[...]
    h1 = jnp.maximum(h1, 0.0)

    # fc2 + ReLU + residual (residual add kept in f32).
    h2 = jnp.dot(w2_ref[...], h1.astype(jnp.bfloat16),
                 preferred_element_type=jnp.float32) + b2_ref[...]
    h2 = jnp.maximum(h2, 0.0) + h1

    # fc3 (no weight-norm, no activation).
    o_ref[0] = (
        jnp.dot(w3_ref[...], h2.astype(jnp.bfloat16),
                preferred_element_type=jnp.float32) + b3_ref[...]
    ).astype(o_ref.dtype)


def _round_up(x, m):
    return ((x + m - 1) // m) * m


def _pick_pixel_tile(hw, n, per_pixel_bytes, *, tm_max=32768, vmem_budget=16 << 20):
    """Largest lane-aligned pixel tile bounded by tm_max and a VMEM-footprint model.

    tm does NOT need to divide HW (the wrapper pads up to a multiple of tm)."""
    if hw <= 128:
        return hw  # full-extent block is always legal
    tm = min(tm_max, max(128, vmem_budget // max(per_pixel_bytes, 1)),
             _round_up(hw, 128))
    tm -= tm % 128
    tm = max(tm, 128)
    if n < 2:
        # v7x has 2 TensorCores: keep >= 2 "parallel" grid steps when batch is 1.
        tm = min(tm, max(128, _round_up(pl.cdiv(hw, 2), 128)))
    return tm


def endfc_nchw(x_nc_hw, w1, b1, w2, b2, w3, b3, *, tm, out_dtype=jnp.float32):
    """x_nc_hw: [N, C_in, HW_pad] bf16; weights [C_out, C_in] bf16; biases [C_out, 1] f32."""
    N, c_in, HW = x_nc_hw.shape
    hid = w1.shape[0]
    c_out = w3.shape[0]
    assert HW % tm == 0  # guaranteed by wrapper-side padding

    full = lambda n, j: (0, 0)
    return pl.pallas_call(
        _endfc_kernel,
        out_shape=jax.ShapeDtypeStruct((N, c_out, HW), out_dtype),
        grid_spec=pltpu.PrefetchScalarGridSpec(
            num_scalar_prefetch=0,
            grid=(N, HW // tm),
            in_specs=[
                pl.BlockSpec((1, c_in, tm), lambda n, j: (n, 0, j)),
                pl.BlockSpec((hid, c_in), full),
                pl.BlockSpec((hid, 1), full),
                pl.BlockSpec((hid, hid), full),
                pl.BlockSpec((hid, 1), full),
                pl.BlockSpec((c_out, hid), full),
                pl.BlockSpec((c_out, 1), full),
            ],
            out_specs=pl.BlockSpec((1, c_out, tm), lambda n, j: (n, 0, j)),
        ),
        compiler_params=pltpu.CompilerParams(
            # Both grid axes are independent -> shardable across v7x's two TCs.
            dimension_semantics=("parallel", "parallel"),
            # Large pixel tiles need more than v5e's 16 MiB default scoped VMEM;
            # 40 MiB is comfortably under every generation's physical budget.
            vmem_limit_bytes=40 * 1024 * 1024,
        ),
    )(x_nc_hw, w1, b1, w2, b2, w3, b3)


def _weight_norm_fold(v, g):
    """Fold torch.nn.utils.weight_norm: W = g * v / ||v||, norm over all dims
    except the output-channel dim.  v: [C_out, C_in], g: [C_out]."""
    norm = jnp.sqrt(jnp.sum(v * v, axis=1, keepdims=True))
    return (g[:, None] / norm) * v


def make_endfc_params(key, in_feature, out_feature):
    """Deterministic synthetic parameters matching the PyTorch module shapes."""
    hid = 4 * in_feature
    keys = jax.random.split(key, 9)

    def uniform(k, shape, fan_in):
        bound = 1.0 / jnp.sqrt(float(fan_in))
        return jax.random.uniform(k, shape, jnp.float32, -bound, bound)

    # fc1: weight-normed 1x1 conv in_feature -> 4*in_feature
    v1 = uniform(keys[0], (hid, in_feature), in_feature)
    g1 = 1.0 + 0.1 * jax.random.normal(keys[1], (hid,), jnp.float32)
    b1 = uniform(keys[2], (hid,), in_feature)
    w1 = _weight_norm_fold(v1, g1)

    # fc2: weight-normed 1x1 conv 4*in_feature -> 4*in_feature
    v2 = uniform(keys[3], (hid, hid), hid)
    g2 = 1.0 + 0.1 * jax.random.normal(keys[4], (hid,), jnp.float32)
    b2 = uniform(keys[5], (hid,), hid)
    w2 = _weight_norm_fold(v2, g2)

    # fc3: plain 1x1 conv 4*in_feature -> out_feature (norm=False)
    w3 = uniform(keys[6], (out_feature, hid), hid)
    b3 = uniform(keys[7], (out_feature,), hid)

    # Kernel wants left-multiply layout [C_out, C_in]; biases as [C_out, 1]
    # so they broadcast along the lane (pixel) axis.
    return dict(
        w1=w1, b1=b1[:, None],
        w2=w2, b2=b2[:, None],
        w3=w3, b3=b3[:, None],
    )


@functools.partial(jax.jit, static_argnames=("tm_max",))
def endfc_forward(x_nchw, params, *, tm_max=32768):
    """x_nchw: [N, C_in, H, W] -> [N, C_out, H, W] f32."""
    N, C, H, W = x_nchw.shape
    HW = H * W
    hid = params["w1"].shape[0]
    c_out = params["w3"].shape[0]

    # Per-pixel VMEM footprint model for tile sizing:
    #   bf16 x block (double-buffered) + f32 out block (double-buffered)
    #   + f32 in-kernel intermediates (~4 live (hid, tm) tensors).
    per_pixel = 2 * C * 2 + 2 * c_out * 4 + 4 * hid * 4
    tm = _pick_pixel_tile(HW, N, per_pixel, tm_max=tm_max)

    # NCHW -> [N, C, HW] is a free contiguous reshape; cast to bf16 so the
    # input DMA itself is half-width (f32 accumulation happens in-kernel).
    x_flat = x_nchw.reshape(N, C, HW).astype(jnp.bfloat16)

    # Pad the pixel axis up to a multiple of tm (at most tm-1 zero pixels),
    # so tm stays large for any HW factorization; padded pixels are sliced off.
    HW_pad = _round_up(HW, tm)
    if HW_pad != HW:
        x_flat = jnp.pad(x_flat, ((0, 0), (0, 0), (0, HW_pad - HW)))

    out_flat = endfc_nchw(
        x_flat,
        params["w1"].astype(jnp.bfloat16), params["b1"],
        params["w2"].astype(jnp.bfloat16), params["b2"],
        params["w3"].astype(jnp.bfloat16), params["b3"],
        tm=tm,
    )
    if HW_pad != HW:
        out_flat = out_flat[:, :, :HW]
    return out_flat.reshape(N, c_out, H, W)


def _reference_forward(x_nchw, params):
    """Pure-JAX f32 reference (HIGHEST precision) for sanity checking."""
    N, C, H, W = x_nchw.shape
    x = x_nchw.reshape(N, C, H * W)
    hi = jax.lax.Precision.HIGHEST
    h1 = jax.nn.relu(
        jnp.einsum("oc,ncm->nom", params["w1"], x, precision=hi) + params["b1"][None])
    h2 = jax.nn.relu(
        jnp.einsum("oc,ncm->nom", params["w2"], h1, precision=hi) + params["b2"][None]) + h1
    o = jnp.einsum("oc,ncm->nom", params["w3"], h2, precision=hi) + params["b3"][None]
    return o.reshape(N, -1, H, W)


if __name__ == "__main__":
    key = jax.random.PRNGKey(0)
    k_x, k_p = jax.random.split(key)

    in_feature, out_feature = 4, 8
    N, H, W = 2, 16, 16            # HW = 256 -> pixel tile = 256, grid = (2, 1)

    x = jax.random.normal(k_x, (N, in_feature, H, W), jnp.float32)
    params = make_endfc_params(k_p, in_feature, out_feature)

    out = endfc_forward(x, params)
    out = jax.block_until_ready(out)

    ref = _reference_forward(x, params)
    assert out.shape == (N, out_feature, H, W)
    # bf16 matmul inputs with f32 accumulation -> ~1e-2 relative error budget.
    assert jnp.allclose(out, ref, atol=5e-2, rtol=5e-2), float(
        jnp.max(jnp.abs(out - ref)))

    print("KERNEL_OK")
</pallas_src>

<mosaic_0001>
module attributes {stable_mosaic.version = 11 : i64} {
  func.func @_endfc_kernel(%arg0: i32, %arg1: i32, %arg2: memref<1x4x256xbf16, #tpu.memory_space<vmem>>, %arg3: memref<16x4xbf16, #tpu.memory_space<vmem>>, %arg4: memref<16x1xf32, #tpu.memory_space<vmem>>, %arg5: memref<16x16xbf16, #tpu.memory_space<vmem>>, %arg6: memref<16x1xf32, #tpu.memory_space<vmem>>, %arg7: memref<8x16xbf16, #tpu.memory_space<vmem>>, %arg8: memref<8x1xf32, #tpu.memory_space<vmem>>, %arg9: memref<1x8x256xf32, #tpu.memory_space<vmem>>) attributes {dimension_semantics = [#tpu.dimension_semantics<parallel>, #tpu.dimension_semantics<parallel>], iteration_bounds = array<i64: 2, 1>, scalar_prefetch = 0 : i64, scratch_operands = 0 : i64, tpu.core_type = #tpu.core_type<tc>, window_params = [{transform_indices = @transform_0, window_bounds = array<i64: 1, 4, 256>}, {pipeline_mode = #tpu.pipeline_mode<synchronous>, transform_indices = @transform_1, window_bounds = array<i64: 16, 4>}, {pipeline_mode = #tpu.pipeline_mode<synchronous>, transform_indices = @transform_2, window_bounds = array<i64: 16, 1>}, {pipeline_mode = #tpu.pipeline_mode<synchronous>, transform_indices = @transform_3, window_bounds = array<i64: 16, 16>}, {pipeline_mode = #tpu.pipeline_mode<synchronous>, transform_indices = @transform_4, window_bounds = array<i64: 16, 1>}, {pipeline_mode = #tpu.pipeline_mode<synchronous>, transform_indices = @transform_5, window_bounds = array<i64: 8, 16>}, {pipeline_mode = #tpu.pipeline_mode<synchronous>, transform_indices = @transform_6, window_bounds = array<i64: 8, 1>}, {transform_indices = @transform_7, window_bounds = array<i64: 1, 8, 256>}]} {
    %c0 = arith.constant 0 : index
    %c0_0 = arith.constant 0 : index
    %c0_1 = arith.constant 0 : index
    %0 = vector.load %arg2[%c0, %c0_0, %c0_1] : memref<1x4x256xbf16, #tpu.memory_space<vmem>>, vector<1x4x256xbf16>
    %1 = vector.shape_cast %0 : vector<1x4x256xbf16> to vector<4x256xbf16>
    %c0_2 = arith.constant 0 : index
    %c0_3 = arith.constant 0 : index
    %2 = vector.load %arg3[%c0_2, %c0_3] : memref<16x4xbf16, #tpu.memory_space<vmem>>, vector<16x4xbf16>
    %cst = arith.constant dense<0.000000e+00> : vector<16x256xf32>
    %3 = tpu.matmul %2, %1, %cst {dimension_numbers = #tpu.dot_dimension_numbers<[1], [0], [0], [1], [0, 0, 1, 1], [], []>} : vector<16x4xbf16>, vector<4x256xbf16>, vector<16x256xf32> -> vector<16x256xf32>
    %c0_4 = arith.constant 0 : index
    %c0_5 = arith.constant 0 : index
    %4 = vector.load %arg4[%c0_4, %c0_5] : memref<16x1xf32, #tpu.memory_space<vmem>>, vector<16x1xf32>
    %5 = vector.broadcast %4 : vector<16x1xf32> to vector<16x256xf32>
    %6 = arith.addf %3, %5 : vector<16x256xf32>
    %cst_6 = arith.constant 0.000000e+00 : f32
    %7 = vector.broadcast %cst_6 : f32 to vector<16x256xf32>
    %8 = arith.maximumf %6, %7 : vector<16x256xf32>
    %c0_7 = arith.constant 0 : index
    %c0_8 = arith.constant 0 : index
    %9 = vector.load %arg5[%c0_7, %c0_8] : memref<16x16xbf16, #tpu.memory_space<vmem>>, vector<16x16xbf16>
    %10 = arith.truncf %8 : vector<16x256xf32> to vector<16x256xbf16>
    %cst_9 = arith.constant dense<0.000000e+00> : vector<16x256xf32>
    %11 = tpu.matmul %9, %10, %cst_9 {dimension_numbers = #tpu.dot_dimension_numbers<[1], [0], [0], [1], [0, 0, 1, 1], [], []>} : vector<16x16xbf16>, vector<16x256xbf16>, vector<16x256xf32> -> vector<16x256xf32>
    %c0_10 = arith.constant 0 : index
    %c0_11 = arith.constant 0 : index
    %12 = vector.load %arg6[%c0_10, %c0_11] : memref<16x1xf32, #tpu.memory_space<vmem>>, vector<16x1xf32>
    %13 = vector.broadcast %12 : vector<16x1xf32> to vector<16x256xf32>
    %14 = arith.addf %11, %13 : vector<16x256xf32>
    %cst_12 = arith.constant 0.000000e+00 : f32
    %15 = vector.broadcast %cst_12 : f32 to vector<16x256xf32>
    %16 = arith.maximumf %14, %15 : vector<16x256xf32>
    %17 = arith.addf %16, %8 : vector<16x256xf32>
    %c0_13 = arith.constant 0 : index
    %c0_14 = arith.constant 0 : index
    %18 = vector.load %arg7[%c0_13, %c0_14] : memref<8x16xbf16, #tpu.memory_space<vmem>>, vector<8x16xbf16>
    %19 = arith.truncf %17 : vector<16x256xf32> to vector<16x256xbf16>
    %cst_15 = arith.constant dense<0.000000e+00> : vector<8x256xf32>
    %20 = tpu.matmul %18, %19, %cst_15 {dimension_numbers = #tpu.dot_dimension_numbers<[1], [0], [0], [1], [0, 0, 1, 1], [], []>} : vector<8x16xbf16>, vector<16x256xbf16>, vector<8x256xf32> -> vector<8x256xf32>
    %c0_16 = arith.constant 0 : index
    %c0_17 = arith.constant 0 : index
    %21 = vector.load %arg8[%c0_16, %c0_17] : memref<8x1xf32, #tpu.memory_space<vmem>>, vector<8x1xf32>
    %22 = vector.broadcast %21 : vector<8x1xf32> to vector<8x256xf32>
    %23 = arith.addf %20, %22 : vector<8x256xf32>
    %c0_18 = arith.constant 0 : index
    %c0_19 = arith.constant 0 : index
    %c0_20 = arith.constant 0 : index
    %24 = vector.load %arg9[%c0_18, %c0_19, %c0_20] : memref<1x8x256xf32, #tpu.memory_space<vmem>>, vector<1x8x256xf32>
    %25 = vector.shape_cast %24 : vector<1x8x256xf32> to vector<8x256xf32>
    %26 = vector.shape_cast %23 : vector<8x256xf32> to vector<1x8x256xf32>
    tpu.vector_store %arg9[%c0_18, %c0_19, %c0_20], %26 {strides = array<i32>} : memref<1x8x256xf32, #tpu.memory_space<vmem>>, vector<1x8x256xf32>,
    return
  }
  func.func @transform_0(%arg0: i32, %arg1: i32) -> (i32, i32, i32) {
    %c0_i32 = arith.constant 0 : i32
    %c0_i32_0 = arith.constant 0 : i32
    return %arg0, %c0_i32, %arg1 : i32, i32, i32
  }
  func.func @transform_1(%arg0: i32, %arg1: i32) -> (i32, i32) {
    %c0_i32 = arith.constant 0 : i32
    %c0_i32_0 = arith.constant 0 : i32
    %c0_i32_1 = arith.constant 0 : i32
    return %c0_i32, %c0_i32_0 : i32, i32
  }
  func.func @transform_2(%arg0: i32, %arg1: i32) -> (i32, i32) {
    %c0_i32 = arith.constant 0 : i32
    %c0_i32_0 = arith.constant 0 : i32
    %c0_i32_1 = arith.constant 0 : i32
    return %c0_i32, %c0_i32_0 : i32, i32
  }
  func.func @transform_3(%arg0: i32, %arg1: i32) -> (i32, i32) {
    %c0_i32 = arith.constant 0 : i32
    %c0_i32_0 = arith.constant 0 : i32
    %c0_i32_1 = arith.constant 0 : i32
    return %c0_i32, %c0_i32_0 : i32, i32
  }
  func.func @transform_4(%arg0: i32, %arg1: i32) -> (i32, i32) {
    %c0_i32 = arith.constant 0 : i32
    %c0_i32_0 = arith.constant 0 : i32
    %c0_i32_1 = arith.constant 0 : i32
    return %c0_i32, %c0_i32_0 : i32, i32
  }
  func.func @transform_5(%arg0: i32, %arg1: i32) -> (i32, i32) {
    %c0_i32 = arith.constant 0 : i32
    %c0_i32_0 = arith.constant 0 : i32
    %c0_i32_1 = arith.constant 0 : i32
    return %c0_i32, %c0_i32_0 : i32, i32
  }
  func.func @transform_6(%arg0: i32, %arg1: i32) -> (i32, i32) {
    %c0_i32 = arith.constant 0 : i32
    %c0_i32_0 = arith.constant 0 : i32
    %c0_i32_1 = arith.constant 0 : i32
    return %c0_i32, %c0_i32_0 : i32, i32
  }
  func.func @transform_7(%arg0: i32, %arg1: i32) -> (i32, i32, i32) {
    %c0_i32 = arith.constant 0 : i32
    %c0_i32_0 = arith.constant 0 : i32
    return %arg0, %c0_i32, %arg1 : i32, i32, i32
  }
}

</mosaic_0001>

<bundles_post_ra>
// kernel: endfc_forward.1
= control target key start
LH: loop header
LB: loop body
LE: loop exit
PB: predicated region body
PF: predicated region fallthrough
CT: control target
= control target key end

     0   :  { %s694_s24 = smov 0   ;;  %s696_s25 = smov 0   ;;  %s759_s0 = inlined_call_operand.vmem [shape: bf16[2,4,256], index: 0, kind: input, shape index: {}]   ;;  %s760_s1 = inlined_call_operand.vmem [shape: bf16[16,4], index: 1, kind: input, shape index: {}]   ;;  %s761_s2 = inlined_call_operand.vmem [shape: f32[16,1], index: 2, kind: input, shape index: {}]   ;;  %s762_s3 = inlined_call_operand.vmem [shape: bf16[16,16], index: 3, kind: input, shape index: {}]   ;;  %s763_s4 = inlined_call_operand.vmem [shape: f32[16,1], index: 4, kind: input, shape index: {}]   ;;  %s764_s5 = inlined_call_operand.vmem [shape: bf16[8,16], index: 5, kind: input, shape index: {}]   ;;  %s765_s6 = inlined_call_operand.vmem [shape: f32[8,1], index: 6, kind: input, shape index: {}]   ;;  %s766_s7 = inlined_call_operand.vmem [shape: f32[2,8,256], index: 7, kind: output, shape index: {}]  }
   0x1   :  { %s698_s26 = smov 0  }
   0x2 LB: > { %s29_s27 = sadd.s32 1, %s647_s25  ;;  %p576_p0 = scmp.ge.s32.totalorder %s651_s26, 1  ;;  %s651_s26 = sphi %s698_s26, %s17_s26   ;;  %s647_s25 = sphi %s696_s25, %s768_s25   ;;  %s643_s24 = sphi %s694_s24, %s767_s24  }
   0x3   : > { %p31_p1 = scmp.ge.s32.totalorder %s29_s27, 2  ;;  %p258_p2 = scmp.lt.s32.totalorder %s651_s26, 3 }
   0x5   : > { %s770_s27 = smov (%p31_p1, %s29_s27), 0  ;;  %p259_p3 = pnand %p576_p0, %p258_p2 }
   0x6   : > { %p299_p4 = scmp.lt.s32.totalorder (!%p259_p3), %s643_s24, 1 }
   0x7   : > { %262 = sbr.rel (%p259_p3) target bundleno = 456 (0x1c8), region = 48 }
   0xc   : > { %v322_v0 = vld [vmem:[%s761_s2] sm:$0xff]  ;;  %v653_v1 = vmov 0   ;;  %s772_s24 = smov (!%p299_p4, %s643_s24), 1  ;;  %v323_v3 = vld [vmem:[%s761_s2 + $0x8] sm:$0xff]  ;;  %vm347_vm0 = vcmask 1041408   ;;  %vm343_vm1 = vcmask 31744  }
   0xd   : > { %626 = vset.pattern.permute.xlu0 %v653_v1  ;;  %627 = vset.pattern.permute.xlu1 %v653_v1  ;;  %s597_s30 = sshll.u32 %s772_s24, 2  ;;  %v599_v8 = vld [vmem:[%s760_s1] sm:$0xff]  ;;  %v389_v10 = vld [vmem:[%s763_s4 + $0x8] sm:$0xff]  ;;  %vm405_vm2 = vcmask 130048   ;;  %s598_s29 = sshll.u32 %s772_s24, 4 }
   0xe   : > { %326 = vperm.xlu0 %626, %v322_v0   ;;  %628 = vset.pattern.permute.xlu2 %v653_v1  ;;  %s306_s10 = scalar_lea.vmem %s759_s0, %s597_s30  ;;  %v388_v9 = vld [vmem:[%s763_s4] sm:$0xff]  ;;  %s316_s9 = scalar_lea.vmem %s766_s7, %s598_s29 }
   0xf   : > { %v319_v2 = vld [vmem:[%s306_s10] sm:$0xf]  ;;  %392 = vperm.xlu1 %627, %v388_v9  }
  0x10   : > { %340 = vst [vmem:[#allocation1] ss:$4 sm:$0xff] %v319_v2  ;;  %v600_v27 = vld [vmem:[%s762_s3] sm:$0xff] }
  0x11   : > { %v448_v28 = vld [vmem:[%s765_s6] sm:$0xff] }
  0x12   : > { %451 = vperm.xlu2 %628, %v448_v28   ;;  %v445_v49 = vld [vmem:[%s764_s5] sm:$0xf] }
  0x16   : > { %331 = vperm.xlu0 %626, %v323_v3  }
  0x17   : > { %v341_v4 = vld.sshfl [vmem:[#allocation1] sm:$0xff pattern:$0x73625140]  ;;  %v342_v5 = vld.sshfl [vmem:[#allocation1 + $0x8] sm:$0xff pattern:$0x73625140]  ;;  %397 = vperm.xlu1 %627, %v389_v10  }
  0x18   : > { %v348_v6 = vsel %vm347_vm0, %v341_v4, 0  ;;  %v350_v7 = vsel %vm347_vm0, %v342_v5, 0 }
  0x19   : > { %359 = vmatpush.bf16.msra.mxu0 %v348_v6  ;;  %373 = vmatpush.bf16.msra.mxu1 %v350_v7 }
  0x1c   : > { %585 = vmatmul.msk.bf16.vlgmr.msra.gmra.mxu0 %vm343_vm1, %v599_v8  ;;  %586 = vmatmul.msk.bf16.vlgmr.msra.gmra.mxu1 %vm343_vm1, %v599_v8 }
  0x6c   : > { %v452_v50 = vpop.permute.xlu2 %451 }
  0x80   : > { %v327_v11 = vpop.permute.xlu0 %326 }
  0x81   : > { %v393_v29 = vpop.permute.xlu1 %392 }
  0x88   : > { %v332_v14 = vpop.permute.xlu0 %331 }
  0x89   : > { %v398_v34 = vpop.permute.xlu1 %397 }
  0x99   : > { %v361_v12 = vpop.f32.mrf.mxu0  ;;  %v375_v13 = vpop.f32.mrf.mxu1 }
  0x9a   : > { %v362_v15 = vadd.f32 %v361_v12, %v327_v11  ;;  %v376_v16 = vadd.f32 %v375_v13, %v327_v11 }
  0x9c   : > { %v380_v21 = vmax.f32 %v362_v15, 0.0  ;;  %v381_v22 = vmax.f32 %v376_v16, 0.0 }
  0xa1   : > { %v363_v17 = vpop.f32.mrf.mxu0  ;;  %v377_v18 = vpop.f32.mrf.mxu1 }
  0xa2   : > { %v364_v19 = vadd.f32 %v363_v17, %v332_v14  ;;  %v378_v20 = vadd.f32 %v377_v18, %v332_v14 }
  0xa4   : > { %v382_v23 = vmax.f32 %v364_v19, 0.0  ;;  %v383_v24 = vmax.f32 %v378_v20, 0.0 }
  0xa6   : > { %v386_v25 = vpack.c.bf16 %v382_v23, %v380_v21  ;;  %v387_v26 = vpack.c.bf16 %v383_v24, %v381_v22 }
  0xa8   : > { %416 = vmatpush.bf16.msra.mxu2 %v386_v25  ;;  %430 = vmatpush.bf16.msra.mxu3 %v387_v26 }
  0xab   : > { %591 = vmatmul.msk.bf16.vlgmr.msra.gmra.mxu2 %vm405_vm2, %v600_v27  ;;  %592 = vmatmul.msk.bf16.vlgmr.msra.gmra.mxu3 %vm405_vm2, %v600_v27 }
 0x12e   : > { %v418_v30 = vpop.f32.mrf.mxu2  ;;  %v432_v31 = vpop.f32.mrf.mxu3 }
 0x12f   : > { %v419_v32 = vadd.f32 %v418_v30, %v393_v29  ;;  %v433_v33 = vadd.f32 %v432_v31, %v393_v29 }
 0x131   : > { %v437_v37 = vmax.f32 %v419_v32, 0.0  ;;  %v438_v38 = vmax.f32 %v433_v33, 0.0 }
 0x133   : > { %v441_v43 = vadd.f32 %v437_v37, %v380_v21  ;;  %v442_v44 = vadd.f32 %v438_v38, %v381_v22 }
 0x136   : > { %v420_v35 = vpop.f32.mrf.mxu2  ;;  %v434_v36 = vpop.f32.mrf.mxu3 }
 0x137   : > { %v421_v39 = vadd.f32 %v420_v35, %v398_v34  ;;  %v435_v40 = vadd.f32 %v434_v36, %v398_v34 }
 0x139   : > { %v439_v41 = vmax.f32 %v421_v39, 0.0  ;;  %v440_v42 = vmax.f32 %v435_v40, 0.0 }
 0x13b   : > { %v443_v45 = vadd.f32 %v439_v41, %v382_v23  ;;  %v444_v46 = vadd.f32 %v440_v42, %v383_v24 }
 0x13d   : > { %v446_v47 = vpack.c.bf16 %v443_v45, %v441_v43  ;;  %v447_v48 = vpack.c.bf16 %v444_v46, %v442_v44 }
 0x13f   : > { %464 = vmatpush.bf16.msrb.mxu0 %v446_v47  ;;  %477 = vmatpush.bf16.msrb.mxu1 %v447_v48 }
 0x142   : > { %593 = vmatmul.msk.bf16.vlgmr.msrb.gmra.mxu0 %vm405_vm2, %v445_v49  ;;  %594 = vmatmul.msk.bf16.vlgmr.msrb.gmra.mxu1 %vm405_vm2, %v445_v49 }
 0x1bf   : > { %v466_v51 = vpop.f32.mrf.mxu0  ;;  %v479_v52 = vpop.f32.mrf.mxu1 }
 0x1c0   : > { %v467_v53 = vadd.f32 %v466_v51, %v452_v50  ;;  %v480_v54 = vadd.f32 %v479_v52, %v452_v50 }
 0x1c2   : > { %483 = vst [vmem:[%s316_s9] sm:$0xff] %v467_v53 }
 0x1c3   : > { %484 = vst [vmem:[%s316_s9 + $0x8] sm:$0xff] %v480_v54 }
 0x1c7   : > { %v468_v55 = vpop.f32.mrf.mxu0  ;;  %v481_v56 = vpop.f32.mrf.mxu1 }
 0x1c8 PF: > { %s17_s26 = sadd.s32 1, %s651_s26   ;;  %s767_s24 = smov %s647_s25 }
 0x1c9   : > { %p14_p5 = scmp.ge.s32.totalorder %s17_s26, 4   ;;  %s768_s25 = smov %s770_s27 }
 0x1cb   :  { %16 = sbr.rel (!%p14_p5) target bundleno = 2 (0x2), region = 78 }

</bundles_post_ra>
